<compile_context>
chip_gen: v5e
topology: v5e:2x2
jax: 0.10.0
libtpu: 0.0.40
codegen_flags: <defaults>
</compile_context>

<pallas_src>
import jax
import jax.numpy as jnp
from jax import lax
from jax.experimental import pallas as pl
from jax.experimental.pallas import tpu as pltpu


# ----------------------------------------------------------------------------
# Kernel body: one token-row tile of x against the three resident weights.
# ----------------------------------------------------------------------------
def _qkv_kernel(x_ref, wq_ref, wk_ref, wv_ref, q_ref, k_ref, v_ref):
    x = x_ref[...]
    w_dtype = wq_ref.dtype
    if x.dtype != w_dtype:
        # bf16 MXU operands with f32 accumulation (fast path). This VALU cast
        # is hidden filler under the MXU/DMA critical path.
        x = x.astype(w_dtype)
    q_ref[...] = jnp.dot(x, wq_ref[...],
                         preferred_element_type=jnp.float32).astype(q_ref.dtype)
    k_ref[...] = jnp.dot(x, wk_ref[...],
                         preferred_element_type=jnp.float32).astype(k_ref.dtype)
    v_ref[...] = jnp.dot(x, wv_ref[...],
                         preferred_element_type=jnp.float32).astype(v_ref.dtype)


# ----------------------------------------------------------------------------
# Tiling helpers.
# ----------------------------------------------------------------------------
def _round_up(x, m):
    return ((x + m - 1) // m) * m


def _pick_tm(m, tm_max=512, min_grid=2):
    """Token-row tile.

    Preference: 256-aligned (fills v6e/v7x 2x256x256 MXU passes), then
    128-aligned (v5e MXU / lane tile).  Capped at tm_max and, when the problem
    is large enough to split, shrunk so the grid has >= min_grid steps (keeps
    both v7x TensorCores busy).  Non-divisible M is handled by cdiv grids with
    masked edge blocks, never by shrinking the tile to tiny sizes.
    """
    if m <= 128:
        return _round_up(m, 8)
    want_split = min_grid > 1 and m >= min_grid * 128
    for align in (256, 128):
        if tm_max < align:
            continue
        t = min((tm_max // align) * align, _round_up(m, align))
        if t < align:
            continue
        if want_split:
            while t > align and pl.cdiv(m, t) < min_grid:
                t -= align
            if pl.cdiv(m, t) < min_grid:
                continue
        return t
    return _round_up(min(m, tm_max), 8)


# ----------------------------------------------------------------------------
# Fused QKV projection: one pallas_call, three lane-dense outputs.
# ----------------------------------------------------------------------------
def qkv_projection(x, w_q, w_k, w_v, *, tm_max=512):
    """q, k, v = x @ w_q, x @ w_k, x @ w_v.

    x:   (B, S, D)
    w_*: (D, inner) — already transposed (and ideally pre-cast to bf16) at
         module init, NOT per call.
    Returns (q, k, v), each (B, S, inner) in x.dtype.
    """
    B, S, D = x.shape
    inner = w_q.shape[1]
    assert w_q.shape == w_k.shape == w_v.shape == (D, inner)

    M = B * S
    x2 = x.reshape(M, D)                     # free (contiguous)

    tm = _pick_tm(M, tm_max)
    grid_m = pl.cdiv(M, tm)

    out_dtype = x.dtype
    out_sds = jax.ShapeDtypeStruct((M, inner), out_dtype)

    flops = 2 * M * D * 3 * inner
    bytes_accessed = (M * D * x2.dtype.itemsize
                      + 3 * D * inner * jnp.dtype(w_q.dtype).itemsize
                      + 3 * M * inner * jnp.dtype(out_dtype).itemsize)

    q2, k2, v2 = pl.pallas_call(
        _qkv_kernel,
        out_shape=(out_sds, out_sds, out_sds),
        grid_spec=pltpu.PrefetchScalarGridSpec(
            num_scalar_prefetch=0,
            grid=(grid_m,),
            in_specs=[
                # token-row tile of x; weight blocks are grid-invariant so
                # Pallas DMAs them once and keeps them resident.
                pl.BlockSpec((tm, D), lambda i: (i, 0)),
                pl.BlockSpec((D, inner), lambda i: (0, 0)),
                pl.BlockSpec((D, inner), lambda i: (0, 0)),
                pl.BlockSpec((D, inner), lambda i: (0, 0)),
            ],
            out_specs=[
                pl.BlockSpec((tm, inner), lambda i: (i, 0)),
                pl.BlockSpec((tm, inner), lambda i: (i, 0)),
                pl.BlockSpec((tm, inner), lambda i: (i, 0)),
            ],
        ),
        compiler_params=pltpu.CompilerParams(
            # Independent row tiles -> v7x shards across its 2 TensorCores;
            # just a serial loop on single-core v5e/v6e.
            dimension_semantics=("parallel",),
        ),
        cost_estimate=pl.CostEstimate(
            flops=flops, transcendentals=0, bytes_accessed=bytes_accessed),
    )(x2, w_q, w_k, w_v)

    return (q2.reshape(B, S, inner),
            k2.reshape(B, S, inner),
            v2.reshape(B, S, inner))


# ----------------------------------------------------------------------------
# Module mirror: weights transposed + pre-cast ONCE at init (per perf review).
# ----------------------------------------------------------------------------
class AttentionWithOnlyLinear:
    """JAX/Pallas mirror of the PyTorch module.

    w_* are given in torch Linear.weight layout (inner_dim, dim); they are
    transposed to (dim, inner_dim) and cast to bf16 exactly once here.
    forward() computes q, k, v (all three are materialized, matching the
    PyTorch module) and returns v.
    """

    def __init__(self, w_q, w_k, w_v, *, use_bf16_mxu=True, tm_max=512):
        w_dtype = jnp.bfloat16 if use_bf16_mxu else jnp.float32
        self.w_q = jnp.asarray(w_q).T.astype(w_dtype)
        self.w_k = jnp.asarray(w_k).T.astype(w_dtype)
        self.w_v = jnp.asarray(w_v).T.astype(w_dtype)
        self.tm_max = tm_max

    def __call__(self, x):
        # TODO(synk): if the benchmark permits skipping q/k HBM writeback,
        # emit only the V projection to cut output bytes 3x on v6e/v7x.
        q, k, v = qkv_projection(x, self.w_q, self.w_k, self.w_v,
                                 tm_max=self.tm_max)
        del q, k  # computed (as in the PyTorch module) but only v is returned
        return v


if __name__ == "__main__":
    # Small ViT-ish shapes: batch=2, seq=128, dim=128, heads=4, dim_head=32
    B, S, D = 2, 128, 128
    heads, dim_head = 4, 32
    inner = heads * dim_head  # 128

    key = jax.random.PRNGKey(0)
    kx, kq, kk, kv = jax.random.split(key, 4)

    x = jax.random.normal(kx, (B, S, D), dtype=jnp.float32)
    scale = 1.0 / jnp.sqrt(jnp.float32(D))
    # torch Linear(dim, inner, bias=False).weight layout: (inner_dim, dim)
    w_q_t = jax.random.normal(kq, (inner, D), dtype=jnp.float32) * scale
    w_k_t = jax.random.normal(kk, (inner, D), dtype=jnp.float32) * scale
    w_v_t = jax.random.normal(kv, (inner, D), dtype=jnp.float32) * scale

    # Exact-f32 reference for the value projection (what forward() returns).
    v_ref = jnp.einsum("bsd,ed->bse", x, w_v_t,
                       precision=lax.Precision.HIGHEST)

    # Default fast path: bf16 weights pre-cast at init, bf16 MXU, f32 accum.
    module = AttentionWithOnlyLinear(w_q_t, w_k_t, w_v_t)
    v_out = jax.block_until_ready(module(x))
    assert v_out.shape == (B, S, inner)
    assert jnp.allclose(v_out, v_ref, atol=3e-2, rtol=3e-2), \
        "bf16-MXU kernel mismatch vs f32 reference"

    # Full-f32 correctness mode (never benchmarked), tight tolerance.
    module_f32 = AttentionWithOnlyLinear(w_q_t, w_k_t, w_v_t,
                                         use_bf16_mxu=False)
    v_f32 = jax.block_until_ready(module_f32(x))
    assert jnp.allclose(v_f32, v_ref, atol=1e-3, rtol=1e-3), \
        "f32 kernel mismatch vs f32 reference"

    print("KERNEL_OK")
</pallas_src>

<mosaic_0001>
module attributes {stable_mosaic.version = 11 : i64} {
  func.func @_qkv_kernel(%arg0: i32, %arg1: memref<128x128xf32, #tpu.memory_space<vmem>>, %arg2: memref<128x128xbf16, #tpu.memory_space<vmem>>, %arg3: memref<128x128xbf16, #tpu.memory_space<vmem>>, %arg4: memref<128x128xbf16, #tpu.memory_space<vmem>>, %arg5: memref<128x128xf32, #tpu.memory_space<vmem>>, %arg6: memref<128x128xf32, #tpu.memory_space<vmem>>, %arg7: memref<128x128xf32, #tpu.memory_space<vmem>>) attributes {dimension_semantics = [#tpu.dimension_semantics<parallel>], iteration_bounds = array<i64: 2>, scalar_prefetch = 0 : i64, scratch_operands = 0 : i64, tpu.core_type = #tpu.core_type<tc>, window_params = [{transform_indices = @transform_0, window_bounds = array<i64: 128, 128>}, {pipeline_mode = #tpu.pipeline_mode<synchronous>, transform_indices = @transform_1, window_bounds = array<i64: 128, 128>}, {pipeline_mode = #tpu.pipeline_mode<synchronous>, transform_indices = @transform_2, window_bounds = array<i64: 128, 128>}, {pipeline_mode = #tpu.pipeline_mode<synchronous>, transform_indices = @transform_3, window_bounds = array<i64: 128, 128>}, {transform_indices = @transform_4, window_bounds = array<i64: 128, 128>}, {transform_indices = @transform_5, window_bounds = array<i64: 128, 128>}, {transform_indices = @transform_6, window_bounds = array<i64: 128, 128>}]} {
    %c0 = arith.constant 0 : index
    %c0_0 = arith.constant 0 : index
    %0 = vector.load %arg1[%c0, %c0_0] : memref<128x128xf32, #tpu.memory_space<vmem>>, vector<128x128xf32>
    %1 = arith.truncf %0 : vector<128x128xf32> to vector<128x128xbf16>
    %c0_1 = arith.constant 0 : index
    %c0_2 = arith.constant 0 : index
    %2 = vector.load %arg2[%c0_1, %c0_2] : memref<128x128xbf16, #tpu.memory_space<vmem>>, vector<128x128xbf16>
    %cst = arith.constant dense<0.000000e+00> : vector<128x128xf32>
    %3 = tpu.matmul %1, %2, %cst {dimension_numbers = #tpu.dot_dimension_numbers<[1], [0], [0], [1], [0, 0, 1, 1], [], []>} : vector<128x128xbf16>, vector<128x128xbf16>, vector<128x128xf32> -> vector<128x128xf32>
    %c0_3 = arith.constant 0 : index
    %c0_4 = arith.constant 0 : index
    %4 = vector.load %arg5[%c0_3, %c0_4] : memref<128x128xf32, #tpu.memory_space<vmem>>, vector<128x128xf32>
    tpu.vector_store %arg5[%c0_3, %c0_4], %3 {strides = array<i32>} : memref<128x128xf32, #tpu.memory_space<vmem>>, vector<128x128xf32>,
    %c0_5 = arith.constant 0 : index
    %c0_6 = arith.constant 0 : index
    %5 = vector.load %arg3[%c0_5, %c0_6] : memref<128x128xbf16, #tpu.memory_space<vmem>>, vector<128x128xbf16>
    %cst_7 = arith.constant dense<0.000000e+00> : vector<128x128xf32>
    %6 = tpu.matmul %1, %5, %cst_7 {dimension_numbers = #tpu.dot_dimension_numbers<[1], [0], [0], [1], [0, 0, 1, 1], [], []>} : vector<128x128xbf16>, vector<128x128xbf16>, vector<128x128xf32> -> vector<128x128xf32>
    %c0_8 = arith.constant 0 : index
    %c0_9 = arith.constant 0 : index
    %7 = vector.load %arg6[%c0_8, %c0_9] : memref<128x128xf32, #tpu.memory_space<vmem>>, vector<128x128xf32>
    tpu.vector_store %arg6[%c0_8, %c0_9], %6 {strides = array<i32>} : memref<128x128xf32, #tpu.memory_space<vmem>>, vector<128x128xf32>,
    %c0_10 = arith.constant 0 : index
    %c0_11 = arith.constant 0 : index
    %8 = vector.load %arg4[%c0_10, %c0_11] : memref<128x128xbf16, #tpu.memory_space<vmem>>, vector<128x128xbf16>
    %cst_12 = arith.constant dense<0.000000e+00> : vector<128x128xf32>
    %9 = tpu.matmul %1, %8, %cst_12 {dimension_numbers = #tpu.dot_dimension_numbers<[1], [0], [0], [1], [0, 0, 1, 1], [], []>} : vector<128x128xbf16>, vector<128x128xbf16>, vector<128x128xf32> -> vector<128x128xf32>
    %c0_13 = arith.constant 0 : index
    %c0_14 = arith.constant 0 : index
    %10 = vector.load %arg7[%c0_13, %c0_14] : memref<128x128xf32, #tpu.memory_space<vmem>>, vector<128x128xf32>
    tpu.vector_store %arg7[%c0_13, %c0_14], %9 {strides = array<i32>} : memref<128x128xf32, #tpu.memory_space<vmem>>, vector<128x128xf32>,
    return
  }
  func.func @transform_0(%arg0: i32) -> (i32, i32) {
    %c0_i32 = arith.constant 0 : i32
    %c0_i32_0 = arith.constant 0 : i32
    return %arg0, %c0_i32 : i32, i32
  }
  func.func @transform_1(%arg0: i32) -> (i32, i32) {
    %c0_i32 = arith.constant 0 : i32
    %c0_i32_0 = arith.constant 0 : i32
    %c0_i32_1 = arith.constant 0 : i32
    return %c0_i32, %c0_i32_0 : i32, i32
  }
  func.func @transform_2(%arg0: i32) -> (i32, i32) {
    %c0_i32 = arith.constant 0 : i32
    %c0_i32_0 = arith.constant 0 : i32
    %c0_i32_1 = arith.constant 0 : i32
    return %c0_i32, %c0_i32_0 : i32, i32
  }
  func.func @transform_3(%arg0: i32) -> (i32, i32) {
    %c0_i32 = arith.constant 0 : i32
    %c0_i32_0 = arith.constant 0 : i32
    %c0_i32_1 = arith.constant 0 : i32
    return %c0_i32, %c0_i32_0 : i32, i32
  }
  func.func @transform_4(%arg0: i32) -> (i32, i32) {
    %c0_i32 = arith.constant 0 : i32
    %c0_i32_0 = arith.constant 0 : i32
    return %arg0, %c0_i32 : i32, i32
  }
  func.func @transform_5(%arg0: i32) -> (i32, i32) {
    %c0_i32 = arith.constant 0 : i32
    %c0_i32_0 = arith.constant 0 : i32
    return %arg0, %c0_i32 : i32, i32
  }
  func.func @transform_6(%arg0: i32) -> (i32, i32) {
    %c0_i32 = arith.constant 0 : i32
    %c0_i32_0 = arith.constant 0 : i32
    return %arg0, %c0_i32 : i32, i32
  }
}

</mosaic_0001>

<bundles_post_ra>
// kernel: tpu_custom_call.1
= control target key start
LH: loop header
LB: loop body
LE: loop exit
PB: predicated region body
PF: predicated region fallthrough
CT: control target
= control target key end

     0   :  { %s1879_s0 = inlined_call_operand.hbm [shape: f32[256,128], index: 0, kind: input, shape index: {}]   ;;  %s1880_s1 = inlined_call_operand.hbm [shape: bf16[128,128], index: 1, kind: input, shape index: {}]   ;;  %s1881_s2 = inlined_call_operand.hbm [shape: bf16[128,128], index: 2, kind: input, shape index: {}]   ;;  %s1882_s3 = inlined_call_operand.hbm [shape: bf16[128,128], index: 3, kind: input, shape index: {}]   ;;  %s1883_s4 = inlined_call_operand.hbm [shape: f32[256,128], index: 4, kind: output, shape index: {0}]   ;;  %s1884_s5 = inlined_call_operand.hbm [shape: f32[256,128], index: 5, kind: output, shape index: {1}]   ;;  %s1885_s6 = inlined_call_operand.hbm [shape: f32[256,128], index: 6, kind: output, shape index: {2}]  }
   0x1   :  { %1887 = sst [smem:[#allocation19_spill]] %s1879_s0 }
   0x2   :  { %1888 = sst [smem:[#allocation20_spill]] %s1880_s1 }
   0x3   :  { %1889 = sst [smem:[#allocation21_spill]] %s1881_s2 }
   0x4   :  { %12 = vsyncpa [#allocation3], 0 }
   0x5   :  { %14 = vsyncpa [#allocation3 + $0x1], 0 }
   0x6   :  { %15 = vsyncpa [#allocation6], 0 }
   0x7   :  { %16 = vsyncpa [#allocation9], 0 }
   0x8   :  { %17 = vsyncpa [#allocation4], 0 }
   0x9   :  { %19 = vsyncpa [#allocation4 + $0x1], 0 }
   0xa   :  { %20 = vsyncpa [#allocation12], 0 }
   0xb   :  { %22 = vsyncpa [#allocation12 + $0x1], 0  ;;  %s1549_s21 = smov 0   ;;  %s1551_s22 = smov 0  }
   0xc   :  { %s1553_s23 = smov 0   ;;  %s1555_s24 = smov 0  }
   0xd LB: > { %s1570_s25 = sadd.s32 4294967295, %s1503_s24   ;;  %s1886_s26 = sadd.s32 4294967294, %s1503_s24   ;;  %s1503_s24 = sphi %s1555_s24, %s1904_s24   ;;  %s1499_s23 = sphi %s1553_s23, %s1903_s23   ;;  %s1495_s22 = sphi %s1551_s22, %s1902_s22   ;;  %s1491_s21 = sphi %s1549_s21, %s1901_s21  }
   0xe   : > { %p48_p0 = scmp.ne.s32.totalorder %s1495_s22, %s1491_s21  ;;  %p49_p1 = scmp.eq.s32.totalorder %s1570_s25, 0 }
   0xf   : > { %p135_p2 = scmp.eq.s32.totalorder %s1570_s25, 1  ;;  %p141_p3 = scmp.eq.s32.totalorder %s1886_s26, 1 }
  0x10   : > { %p1581_p4 = por %p49_p1, %p48_p0  ;;  %p981_p5 = scmp.ge.s32.totalorder %s1503_s24, 1 }
  0x11   : > { %p1586_p6 = por %p141_p3, %p48_p0  ;;  %p200_p7 = scmp.lt.s32.totalorder %s1503_s24, 3 }
  0x12   : > { %s1892_s1 = sld [smem:[#allocation20_spill]]  ;;  %s1505_s9 = smov [#allocation5]  }
  0x13   : > { %p1594_p8 = pnand %p981_p5, %p200_p7  ;;  %s213_s10 = sshll.u32 %s1505_s9, 4  ;;  %s214_s10 = int_to_ptr.vmem [resolvable:$true] %s213_s10 }
  0x14   : > { %s1895_s2 = sld [smem:[#allocation21_spill]]  ;;  %s1506_s15 = smov 64  }
  0x15   : > { %p1176_p9 = pneg %p1594_p8  ;;  %s1507_s16 = smov 4  }
  0x16   : > { %s1508_s17 = smov [#allocation7]   ;;  %s239_s29 = sshll.u32 %s1882_s3, 4  ;;  %s240_s29 = int_to_ptr.hbm [resolvable:$true] %s239_s29 }
  0x17   : > { %p1602_p10 = pnand %p1176_p9, %p49_p1  ;;  %s227_s18 = sshll.u32 %s1508_s17, 4  ;;  %s228_s18 = int_to_ptr.vmem [resolvable:$true] %s227_s18 }
  0x18   : > { %s211_s7 = sshll.u32 %s1892_s1, 4  ;;  %s1509_s30 = smov [#allocation8]   ;;  %s212_s7 = int_to_ptr.hbm [resolvable:$true] %s211_s7 }
  0x19   : > { %1179 = dma.hbm_to_vmem [thread:$0]  (!%p1602_p10), %s212_s7, 1024, %s214_s10, [#allocation6], %s1506_s15, %s1506_s15, %s1507_s16  }
  0x1a   : > { %s225_s14 = sshll.u32 %s1895_s2, 4  ;;  %s241_s9 = sshll.u32 %s1509_s30, 4  ;;  %s226_s14 = int_to_ptr.hbm [resolvable:$true] %s225_s14  ;;  %s242_s9 = int_to_ptr.vmem [resolvable:$true] %s241_s9 }
  0x1b   : > { %1182 = dma.hbm_to_vmem [thread:$0]  (!%p1602_p10), %s226_s14, 1024, %s228_s18, [#allocation6], %s1506_s15, %s1506_s15, %s1507_s16  }
  0x1c   : > { %s1618_s7 = sadd.s32 1, %s1503_s24   ;;  %s35_s12 = sadd.s32 1, %s1499_s23 }
  0x1d   : > { %1185 = dma.hbm_to_vmem [thread:$0]  (!%p1602_p10), %s240_s29, 1024, %s242_s9, [#allocation9], %s1506_s15, %s1506_s15, %s1507_s16  }
  0x1e   : > { %s32_s10 = ssub.s32 %s1503_s24, %s1618_s7  ;;  %p42_p13 = scmp.ne.s32.totalorder %s1499_s23, %s1495_s22 }
  0x1f   : > { %p33_p12 = scmp.eq.s32.totalorder %s32_s10, 0  ;;  %p43_p0 = scmp.eq.s32.totalorder %s1503_s24, 0 }
  0x20   : > { %p1203_p3 = scmp.lt.s32.totalorder %s1503_s24, 2  ;;  %p1634_p7 = por %p135_p2, %p42_p13 }
  0x21   : > { %s1630_s13 = scalar_select %p33_p12, %s1499_s23, %s35_s12  }
  0x22   : > { %p44_p5 = por %p43_p0, %p42_p13  ;;  %s255_s17 = sand.u32 1, %s1499_s23  }
  0x23   : > { %s1104_s18 = sshll.u32 %s1503_s24, 7  ;;  %s986_s11 = sshll.u32 %s255_s17, 7 }
  0x24   : > { %s1897_s0 = sld [smem:[#allocation19_spill]]  ;;  %s259_s29 = scalar_lea.vmem [#allocation2], %s986_s11 }
  0x25   : > { %s267_s30 = sshll.u32 %s259_s29, 4  ;;  %p1645_p9 = pnand %p1203_p3, %p44_p5  ;;  %s268_s30 = int_to_ptr.vmem [resolvable:$true] %s267_s30 }
  0x26   : > { %s256_s10 = scalar_lea.sflag [#allocation3], %s255_s17 }
  0x27   : > { %p1343_p10 = pneg %p1645_p9 }
  0x2a   : > { %s264_s16 = scalar_lea.hbm %s1897_s0, %s1104_s18  ;;  %s1346_s19 = scalar_lea.hbm %s1897_s0, 256 }
  0x2b   : > { %s265_s20 = sshll.u32 %s264_s16, 4  ;;  %s266_s20 = int_to_ptr.hbm [resolvable:$true] %s265_s20 }
  0x2c   : > { %s1339_s12 = sshra.s32 %s266_s20, 4  ;;  %s1340_s12 = int_to_ptr.hbm [resolvable:$true] %s1339_s12 }
  0x2d   : > { %s1341_s26 = scalar_lea.hbm %s1340_s12, 128  ;;  %p1347_p0 = scmp.lt.s32.totalorder %s1340_s12, %s1897_s0 }
  0x2e   : > { %p1342_p2 = scmp.ne.s32.totalorder %s1340_s12, %s1341_s26  ;;  %p1348_p3 = scmp.lt.s32.totalorder %s1346_s19, %s1341_s26 }
  0x30   : > { %p1344_p12 = pnand %p1343_p10, %p1342_p2  ;;  %p1349_p5 = por %p1348_p3, %p1347_p0 }
  0x32   : > { %p1345_p13 = pneg %p1344_p12 }
  0x34   : > { %p1350_p11 = pnand %p1349_p5, %p1345_p13 }
  0x36   : > { %1353 = shalt.err (!%p1350_p11)
}
  0x37   : > { %s1510_s17 = smov 128   ;;  %s1511_s29 = smov 8  }
  0x38   : > { %1189 = dma.hbm_to_vmem [thread:$0]  (!%p1645_p9), %s266_s20, 2048, %s268_s30, %s256_s10, %s1510_s17, %s1510_s17, %s1511_s29  }
  0x39   : > { %279 = sbr.rel (%p1594_p8) target bundleno = 348 (0x15c), region = 36  ;;  %s1662_s18 = sand.u32 (!%p1594_p8), 1, %s1495_s22  }
  0x3a   : > { %s1665_s11 = sshll.u32 (!%p1594_p8), %s1662_s18, 7  ;;  %s282_s26 = scalar_lea.sflag (!%p1594_p8), [#allocation3], %s1662_s18 }
  0x3b   : > { %s1669_s12 = scalar_lea.vmem (!%p1594_p8), [#allocation2], %s1665_s11 }
  0x3e   : > { %1470 = dma.done.wait (%p1581_p4), %s282_s26, 2048  }
  0x3f   : > { %1472 = vsyncadd (%p1581_p4), %s282_s26, 4294965248 }
  0x40   : > { %1474 = dma.done.wait (%p49_p1), [#allocation6], 2048  }
  0x41   : > { %1476 = vsyncadd (%p49_p1), [#allocation6], 4294965248 }
  0x42   : > { %1478 = dma.done.wait (%p49_p1), [#allocation9], 1024  }
  0x43   : > { %1480 = vsyncadd (%p49_p1), [#allocation9], 4294966272  ;;  %v1112_v0 = vld [vmem:[#allocation5 + $0x38] sm:$0xff]  ;;  %v1111_v3 = vld [vmem:[#allocation5 + $0x30] sm:$0xff]  ;;  %s1724_s27 = scalar_lea.vmem [#allocation10], %s1665_s11  ;;  %s1728_s8 = scalar_lea.vmem [#allocation11], %s1665_s11 }
  0x44   : > { %v1120_v1 = vld [vmem:[#allocation7 + $0x38] sm:$0xff]  ;;  %432 = vmatpush.bf16.msra.mxu0 %v1112_v0  ;;  %1132 = vmatpush.bf16.msra.mxu3 %v1112_v0  ;;  %v1119_v4 = vld [vmem:[#allocation7 + $0x30] sm:$0xff]  ;;  %v1110_v6 = vld [vmem:[#allocation5 + $0x28] sm:$0xff]  ;;  %s1733_s20 = scalar_lea.vmem [#allocation13], %s1665_s11  ;;  %s1129_s30 = sshll.u32 %s1570_s25, 7 }
  0x45   : > { %v1683_v2 = vld [vmem:[#allocation8 + $0x38] sm:$0xff]  ;;  %561 = vmatpush.bf16.msra.mxu1 %v1120_v1  ;;  %v1686_v5 = vld [vmem:[#allocation8 + $0x30] sm:$0xff]  ;;  %v1118_v7 = vld [vmem:[#allocation7 + $0x28] sm:$0xff]  ;;  %s760_s9 = sand.u32 1, %s1570_s25   ;;  %s794_s15 = scalar_lea.hbm %s1884_s5, %s1129_s30 }
  0x46   : > { %690 = vmatpush.bf16.msra.mxu2 %v1683_v2  ;;  %v1689_v8 = vld [vmem:[#allocation8 + $0x28] sm:$0xff]  ;;  %v1109_v9 = vld [vmem:[#allocation5 + $0x20] sm:$0xff]  ;;  %v1108_v12 = vld [vmem:[#allocation5 + $0x18] sm:$0xff]  ;;  %s795_s16 = sshll.u32 %s1728_s8, 4  ;;  %s777_s11 = scalar_lea.hbm %s1883_s4, %s1129_s30  ;;  %s1789_s16 = int_to_ptr.vmem [resolvable:$true] %s795_s16 }
  0x47   : > { %v1117_v10 = vld [vmem:[#allocation7 + $0x20] sm:$0xff]  ;;  %v1116_v13 = vld [vmem:[#allocation7 + $0x18] sm:$0xff]  ;;  %v1107_v15 = vld [vmem:[#allocation5 + $0x10] sm:$0xff]  ;;  %s1783_s26 = sshll.u32 %s794_s15, 4  ;;  %s1786_s0 = sshll.u32 %s777_s11, 4  ;;  %s798_s26 = int_to_ptr.hbm [resolvable:$true] %s1783_s26  ;;  %s781_s0 = int_to_ptr.hbm [resolvable:$true] %s1786_s0 }
  0x48   : > { %433 = vmatpush.bf16.msra.mxu0 %v1111_v3  ;;  %1133 = vmatpush.bf16.msra.mxu3 %v1111_v3  ;;  %v1692_v11 = vld [vmem:[#allocation8 + $0x20] sm:$0xff]  ;;  %v1695_v14 = vld [vmem:[#allocation8 + $0x18] sm:$0xff]  ;;  %v1115_v16 = vld [vmem:[#allocation7 + $0x10] sm:$0xff]  ;;  %s811_s19 = scalar_lea.hbm %s1885_s6, %s1129_s30  ;;  %s812_s17 = sshll.u32 %s1733_s20, 4  ;;  %s813_s17 = int_to_ptr.vmem [resolvable:$true] %s812_s17 }
  0x49   : > { %562 = vmatpush.bf16.msra.mxu1 %v1119_v4  ;;  %v1698_v17 = vld [vmem:[#allocation8 + $0x10] sm:$0xff]  ;;  %v1106_v18 = vld [vmem:[#allocation5 + $0x8] sm:$0xff]  ;;  %v1105_v21 = vld [vmem:[#allocation5] sm:$0xff]  ;;  %s1801_s15 = sshll.u32 %s811_s19, 4  ;;  %s1804_s29 = scalar_lea.sflag [#allocation12], %s760_s9  ;;  %s815_s15 = int_to_ptr.hbm [resolvable:$true] %s1801_s15 }
  0x4a   : > { %691 = vmatpush.bf16.msra.mxu2 %v1686_v5  ;;  %v1114_v19 = vld [vmem:[#allocation7 + $0x8] sm:$0xff]  ;;  %v344_v22 = vld [vmem:[%s1669_s12] sm:$0xff]  ;;  %v346_v30 = vld [vmem:[%s1669_s12 + $0x10] sm:$0xff]  ;;  %s1383_s11 = sshra.s32 %s798_s26, 4  ;;  %s1384_s11 = int_to_ptr.hbm [resolvable:$true] %s1383_s11 }
  0x4b   : > { %v1122_v20 = vld [vmem:[#allocation8 + $0x8] sm:$0xff]  ;;  %v356_v24 = vld [vmem:[%s1669_s12 + $0x60] sm:$0xff]  ;;  %v347_v31 = vld [vmem:[%s1669_s12 + $0x18] sm:$0xff]  ;;  %s1385_s1 = scalar_lea.hbm %s1384_s11, 128  ;;  %p1390_p11 = scmp.lt.s32.totalorder %s1384_s11, %s1884_s5 }
  0x4c   : > { %434 = vmatpush.bf16.msra.mxu0 %v1110_v6  ;;  %1134 = vmatpush.bf16.msra.mxu3 %v1110_v6  ;;  %v345_v23 = vld [vmem:[%s1669_s12 + $0x8] sm:$0xff]  ;;  %v1113_v26 = vld [vmem:[#allocation7] sm:$0xff]  ;;  %v358_v32 = vld [vmem:[%s1669_s12 + $0x70] sm:$0xff]  ;;  %v361_v34 = vpack.c.bf16 %v347_v31, %v346_v30  ;;  %p1386_p1 = scmp.ne.s32.totalorder %s1384_s11, %s1385_s1 }
  0x4d   : > { %563 = vmatpush.bf16.msra.mxu1 %v1118_v7  ;;  %v357_v25 = vld [vmem:[%s1669_s12 + $0x68] sm:$0xff]  ;;  %v1121_v27 = vld [vmem:[#allocation8] sm:$0xff]  ;;  %v360_v28 = vpack.c.bf16 %v345_v23, %v344_v22  ;;  %v359_v33 = vld [vmem:[%s1669_s12 + $0x78] sm:$0xff] }
  0x4e   : > { %692 = vmatpush.bf16.msra.mxu2 %v1689_v8  ;;  %v366_v29 = vpack.c.bf16 %v357_v25, %v356_v24  ;;  %v367_v35 = vpack.c.bf16 %v359_v33, %v358_v32  ;;  %v348_v36 = vld [vmem:[%s1669_s12 + $0x20] sm:$0xff]  ;;  %v349_v37 = vld [vmem:[%s1669_s12 + $0x28] sm:$0xff]  ;;  %v350_v39 = vld [vmem:[%s1669_s12 + $0x30] sm:$0xff]  ;;  %p1387_p4 = pnand %p1386_p1, %p1634_p7 }
  0x4f   : > { %v362_v38 = vpack.c.bf16 %v349_v37, %v348_v36  ;;  %v351_v40 = vld [vmem:[%s1669_s12 + $0x38] sm:$0xff]  ;;  %v352_v42 = vld [vmem:[%s1669_s12 + $0x40] sm:$0xff]  ;;  %v353_v43 = vld [vmem:[%s1669_s12 + $0x48] sm:$0xff] }
  0x50   : > { %435 = vmatpush.bf16.msra.mxu0 %v1109_v9  ;;  %1135 = vmatpush.bf16.msra.mxu3 %v1109_v9  ;;  %v363_v41 = vpack.c.bf16 %v351_v40, %v350_v39  ;;  %v364_v44 = vpack.c.bf16 %v353_v43, %v352_v42  ;;  %v354_v45 = vld [vmem:[%s1669_s12 + $0x50] sm:$0xff]  ;;  %v355_v46 = vld [vmem:[%s1669_s12 + $0x58] sm:$0xff]  ;;  %s778_s12 = sshll.u32 %s1724_s27, 4  ;;  %p1388_p8 = pneg %p1387_p4  ;;  %s1797_s12 = int_to_ptr.vmem [resolvable:$true] %s778_s12 }
  0x51   : > { %564 = vmatpush.bf16.msra.mxu1 %v1117_v10  ;;  %v365_v47 = vpack.c.bf16 %v355_v46, %v354_v45 }
  0x52   : > { %693 = vmatpush.bf16.msra.mxu2 %v1692_v11 }
  0x54   : > { %436 = vmatpush.bf16.msra.mxu0 %v1108_v12  ;;  %1136 = vmatpush.bf16.msra.mxu3 %v1108_v12 }
  0x55   : > { %565 = vmatpush.bf16.msra.mxu1 %v1116_v13 }
  0x56   : > { %694 = vmatpush.bf16.msra.mxu2 %v1695_v14 }
  0x58   : > { %437 = vmatpush.bf16.msra.mxu0 %v1107_v15  ;;  %1137 = vmatpush.bf16.msra.mxu3 %v1107_v15 }
  0x59   : > { %566 = vmatpush.bf16.msra.mxu1 %v1115_v16 }
  0x5a   : > { %695 = vmatpush.bf16.msra.mxu2 %v1698_v17 }
  0x5c   : > { %438 = vmatpush.bf16.msra.mxu0 %v1106_v18  ;;  %1138 = vmatpush.bf16.msra.mxu3 %v1106_v18 }
  0x5d   : > { %567 = vmatpush.bf16.msra.mxu1 %v1114_v19 }
  0x5e   : > { %696 = vmatpush.bf16.msra.mxu2 %v1122_v20 }
  0x60   : > { %439 = vmatpush.bf16.msra.mxu0 %v1105_v21  ;;  %1139 = vmatpush.bf16.msra.mxu3 %v1105_v21 }
  0x61   : > { %568 = vmatpush.bf16.msra.mxu1 %v1113_v26 }
  0x62   : > { %697 = vmatpush.bf16.msra.mxu2 %v1121_v27 }
  0x63   : > { %440 = vmatmul.bf16.vlgmr.msra.gmra.mxu0 %v360_v28  ;;  %470 = vmatmul.bf16.vlgmr.msra.gmra.mxu3 %v366_v29 }
  0x64   : > { %1140 = vmatpush.bf16.msrb.mxu3 %v1120_v1  ;;  %569 = vmatmul.bf16.vlgmr.msra.gmra.mxu1 %v360_v28 }
  0x65   : > { %698 = vmatmul.bf16.vlgmr.msra.gmra.mxu2 %v360_v28 }
  0x68   : > { %1141 = vmatpush.bf16.msrb.mxu3 %v1119_v4 }
  0x6c   : > { %1142 = vmatpush.bf16.msrb.mxu3 %v1118_v7 }
  0x70   : > { %1143 = vmatpush.bf16.msrb.mxu3 %v1117_v10 }
  0x73   : > { %445 = vmatmul.bf16.gmra.mxu0 %v361_v34  ;;  %475 = vmatmul.bf16.gmra.mxu3 %v367_v35 }
  0x74   : > { %1144 = vmatpush.bf16.msrb.mxu3 %v1116_v13  ;;  %574 = vmatmul.bf16.gmra.mxu1 %v361_v34 }
  0x75   : > { %703 = vmatmul.bf16.gmra.mxu2 %v361_v34 }
  0x78   : > { %1145 = vmatpush.bf16.msrb.mxu3 %v1115_v16 }
  0x7c   : > { %1146 = vmatpush.bf16.msrb.mxu3 %v1114_v19 }
  0x80   : > { %1147 = vmatpush.bf16.msrb.mxu3 %v1113_v26 }
  0x83   : > { %450 = vmatmul.bf16.gmra.mxu0 %v362_v38  ;;  %599 = vmatmul.bf16.vlgmr.msrb.gmra.mxu3 %v366_v29 }
  0x84   : > { %1148 = vmatpush.bf16.msra.mxu3 %v1683_v2  ;;  %579 = vmatmul.bf16.gmra.mxu1 %v362_v38 }
  0x85   : > { %708 = vmatmul.bf16.gmra.mxu2 %v362_v38 }
  0x88   : > { %1149 = vmatpush.bf16.msra.mxu3 %v1686_v5 }
  0x8c   : > { %1150 = vmatpush.bf16.msra.mxu3 %v1689_v8 }
  0x90   : > { %1151 = vmatpush.bf16.msra.mxu3 %v1692_v11 }
  0x93   : > { %455 = vmatmul.bf16.gmra.mxu0 %v363_v41  ;;  %604 = vmatmul.bf16.gmra.mxu3 %v367_v35 }
  0x94   : > { %1152 = vmatpush.bf16.msra.mxu3 %v1695_v14  ;;  %584 = vmatmul.bf16.gmra.mxu1 %v363_v41 }
  0x95   : > { %713 = vmatmul.bf16.gmra.mxu2 %v363_v41 }
  0x98   : > { %1153 = vmatpush.bf16.msra.mxu3 %v1698_v17 }
  0x9c   : > { %1154 = vmatpush.bf16.msra.mxu3 %v1122_v20 }
  0xa0   : > { %1155 = vmatpush.bf16.msra.mxu3 %v1121_v27 }
  0xa3   : > { %460 = vmatmul.bf16.gmra.mxu0 %v364_v44  ;;  %728 = vmatmul.bf16.vlgmr.msra.gmra.mxu3 %v366_v29 }
  0xa4   : > { %589 = vmatmul.bf16.gmra.mxu1 %v364_v44 }
  0xa5   : > { %718 = vmatmul.bf16.gmra.mxu2 %v364_v44 }
  0xb3   : > { %465 = vmatmul.bf16.gmra.mxu0 %v365_v47  ;;  %733 = vmatmul.bf16.gmra.mxu3 %v367_v35 }
  0xb4   : > { %594 = vmatmul.bf16.gmra.mxu1 %v365_v47 }
  0xb5   : > { %723 = vmatmul.bf16.gmra.mxu2 %v365_v47 }
  0xe0   : > { %v441_v48 = vpop.f32.mrf.mxu0 }
  0xe1   : > { %481 = vst [vmem:[%s1724_s27] sm:$0xff] %v441_v48  ;;  %v570_v49 = vpop.f32.mrf.mxu1 }
  0xe2   : > { %610 = vst [vmem:[%s1728_s8] sm:$0xff] %v570_v49 }
  0xe6   : > { %v471_v50 = vpop.f32.mrf.mxu3 }
  0xe7   : > { %493 = vst [vmem:[%s1724_s27 + $0x60] sm:$0xff] %v471_v50 }
  0xe8   : > { %v699_v51 = vpop.f32.mrf.mxu2  ;;  %v443_v52 = vpop.f32.mrf.mxu0 }
  0xe9   : > { %739 = vst [vmem:[%s1733_s20] sm:$0xff] %v699_v51  ;;  %v572_v53 = vpop.f32.mrf.mxu1 }
  0xea   : > { %482 = vst [vmem:[%s1724_s27 + $0x8] sm:$0xff] %v443_v52 }
  0xeb   : > { %611 = vst [vmem:[%s1728_s8 + $0x8] sm:$0xff] %v572_v53 }
  0xee   : > { %v473_v54 = vpop.f32.mrf.mxu3 }
  0xef   : > { %494 = vst [vmem:[%s1724_s27 + $0x68] sm:$0xff] %v473_v54 }
  0xf0   : > { %v701_v55 = vpop.f32.mrf.mxu2  ;;  %v446_v56 = vpop.f32.mrf.mxu0 }
  0xf1   : > { %740 = vst [vmem:[%s1733_s20 + $0x8] sm:$0xff] %v701_v55  ;;  %v575_v57 = vpop.f32.mrf.mxu1 }
  0xf2   : > { %483 = vst [vmem:[%s1724_s27 + $0x10] sm:$0xff] %v446_v56 }
  0xf3   : > { %612 = vst [vmem:[%s1728_s8 + $0x10] sm:$0xff] %v575_v57 }
  0xf6   : > { %v476_v58 = vpop.f32.mrf.mxu3 }
  0xf7   : > { %495 = vst [vmem:[%s1724_s27 + $0x70] sm:$0xff] %v476_v58 }
  0xf8   : > { %v704_v59 = vpop.f32.mrf.mxu2  ;;  %v448_v60 = vpop.f32.mrf.mxu0 }
  0xf9   : > { %741 = vst [vmem:[%s1733_s20 + $0x10] sm:$0xff] %v704_v59  ;;  %v577_v61 = vpop.f32.mrf.mxu1 }
  0xfa   : > { %484 = vst [vmem:[%s1724_s27 + $0x18] sm:$0xff] %v448_v60 }
  0xfb   : > { %613 = vst [vmem:[%s1728_s8 + $0x18] sm:$0xff] %v577_v61 }
  0xfe   : > { %v478_v62 = vpop.f32.mrf.mxu3 }
  0xff   : > { %496 = vst [vmem:[%s1724_s27 + $0x78] sm:$0xff] %v478_v62 }
 0x100   : > { %v706_v63 = vpop.f32.mrf.mxu2  ;;  %v451_v0 = vpop.f32.mrf.mxu0 }
 0x101   : > { %742 = vst [vmem:[%s1733_s20 + $0x18] sm:$0xff] %v706_v63  ;;  %v580_v1 = vpop.f32.mrf.mxu1 }
 0x102   : > { %485 = vst [vmem:[%s1724_s27 + $0x20] sm:$0xff] %v451_v0 }
 0x103   : > { %614 = vst [vmem:[%s1728_s8 + $0x20] sm:$0xff] %v580_v1 }
 0x106   : > { %v600_v2 = vpop.f32.mrf.mxu3 }
 0x107   : > { %622 = vst [vmem:[%s1728_s8 + $0x60] sm:$0xff] %v600_v2 }
 0x108   : > { %v709_v3 = vpop.f32.mrf.mxu2  ;;  %v453_v4 = vpop.f32.mrf.mxu0 }
 0x109   : > { %743 = vst [vmem:[%s1733_s20 + $0x20] sm:$0xff] %v709_v3  ;;  %v582_v5 = vpop.f32.mrf.mxu1 }
 0x10a   : > { %486 = vst [vmem:[%s1724_s27 + $0x28] sm:$0xff] %v453_v4 }
 0x10b   : > { %615 = vst [vmem:[%s1728_s8 + $0x28] sm:$0xff] %v582_v5 }
 0x10e   : > { %v602_v6 = vpop.f32.mrf.mxu3 }
 0x10f   : > { %623 = vst [vmem:[%s1728_s8 + $0x68] sm:$0xff] %v602_v6 }
 0x110   : > { %v711_v7 = vpop.f32.mrf.mxu2  ;;  %v456_v8 = vpop.f32.mrf.mxu0 }
 0x111   : > { %744 = vst [vmem:[%s1733_s20 + $0x28] sm:$0xff] %v711_v7  ;;  %v585_v9 = vpop.f32.mrf.mxu1 }
 0x112   : > { %487 = vst [vmem:[%s1724_s27 + $0x30] sm:$0xff] %v456_v8 }
 0x113   : > { %616 = vst [vmem:[%s1728_s8 + $0x30] sm:$0xff] %v585_v9 }
 0x116   : > { %v605_v10 = vpop.f32.mrf.mxu3 }
 0x117   : > { %624 = vst [vmem:[%s1728_s8 + $0x70] sm:$0xff] %v605_v10 }
 0x118   : > { %v714_v11 = vpop.f32.mrf.mxu2  ;;  %v458_v12 = vpop.f32.mrf.mxu0 }
 0x119   : > { %745 = vst [vmem:[%s1733_s20 + $0x30] sm:$0xff] %v714_v11  ;;  %v587_v13 = vpop.f32.mrf.mxu1 }
 0x11a   : > { %488 = vst [vmem:[%s1724_s27 + $0x38] sm:$0xff] %v458_v12 }
 0x11b   : > { %617 = vst [vmem:[%s1728_s8 + $0x38] sm:$0xff] %v587_v13 }
 0x11e   : > { %v607_v14 = vpop.f32.mrf.mxu3 }
 0x11f   : > { %625 = vst [vmem:[%s1728_s8 + $0x78] sm:$0xff] %v607_v14 }
 0x120   : > { %v716_v15 = vpop.f32.mrf.mxu2  ;;  %v461_v16 = vpop.f32.mrf.mxu0 }
 0x121   : > { %746 = vst [vmem:[%s1733_s20 + $0x38] sm:$0xff] %v716_v15  ;;  %v590_v17 = vpop.f32.mrf.mxu1 }
 0x122   : > { %489 = vst [vmem:[%s1724_s27 + $0x40] sm:$0xff] %v461_v16 }
 0x123   : > { %618 = vst [vmem:[%s1728_s8 + $0x40] sm:$0xff] %v590_v17 }
 0x126   : > { %v729_v18 = vpop.f32.mrf.mxu3 }
 0x127   : > { %751 = vst [vmem:[%s1733_s20 + $0x60] sm:$0xff] %v729_v18 }
 0x128   : > { %v719_v19 = vpop.f32.mrf.mxu2  ;;  %v463_v20 = vpop.f32.mrf.mxu0 }
 0x129   : > { %747 = vst [vmem:[%s1733_s20 + $0x40] sm:$0xff] %v719_v19  ;;  %v592_v21 = vpop.f32.mrf.mxu1 }
 0x12a   : > { %490 = vst [vmem:[%s1724_s27 + $0x48] sm:$0xff] %v463_v20 }
 0x12b   : > { %619 = vst [vmem:[%s1728_s8 + $0x48] sm:$0xff] %v592_v21 }
 0x12e   : > { %v731_v22 = vpop.f32.mrf.mxu3 }
 0x12f   : > { %752 = vst [vmem:[%s1733_s20 + $0x68] sm:$0xff] %v731_v22 }
 0x130   : > { %v721_v23 = vpop.f32.mrf.mxu2  ;;  %v466_v24 = vpop.f32.mrf.mxu0 }
 0x131   : > { %748 = vst [vmem:[%s1733_s20 + $0x48] sm:$0xff] %v721_v23  ;;  %v595_v25 = vpop.f32.mrf.mxu1 }
 0x132   : > { %491 = vst [vmem:[%s1724_s27 + $0x50] sm:$0xff] %v466_v24 }
 0x133   : > { %620 = vst [vmem:[%s1728_s8 + $0x50] sm:$0xff] %v595_v25 }
 0x136   : > { %v734_v26 = vpop.f32.mrf.mxu3 }
 0x137   : > { %753 = vst [vmem:[%s1733_s20 + $0x70] sm:$0xff] %v734_v26 }
 0x138   : > { %v724_v27 = vpop.f32.mrf.mxu2  ;;  %v468_v28 = vpop.f32.mrf.mxu0 }
 0x139   : > { %749 = vst [vmem:[%s1733_s20 + $0x50] sm:$0xff] %v724_v27  ;;  %v597_v29 = vpop.f32.mrf.mxu1 }
 0x13a   : > { %492 = vst [vmem:[%s1724_s27 + $0x58] sm:$0xff] %v468_v28  ;;  %s1389_s27 = scalar_lea.hbm %s1884_s5, 256 }
 0x13b   : > { %621 = vst [vmem:[%s1728_s8 + $0x58] sm:$0xff] %v597_v29  ;;  %p1391_p9 = scmp.lt.s32.totalorder %s1389_s27, %s1385_s1 }
 0x13d   : > { %p1392_p2 = por %p1391_p9, %p1390_p11 }
 0x13f   : > { %p1393_p10 = pnand %p1392_p2, %p1388_p8 }
 0x141   : > { %1396 = shalt.err (!%p1393_p10)
}
 0x142   : > { %s1512_s8 = smov 128   ;;  %s1513_s9 = smov 8  }
 0x143   : > { %1171 = dma.vmem_to_hbm [thread:$0]  (%p1634_p7), %s1789_s16, 2048, %s798_s26, %s1804_s29, %s1512_s8, %s1512_s8, %s1513_s9  }
 0x144   : > { %s756_s19 = scalar_lea.sflag [#allocation4], %s1662_s18  ;;  %s1411_s2 = sshra.s32 %s781_s0, 4  ;;  %s1412_s2 = int_to_ptr.hbm [resolvable:$true] %s1411_s2 }
 0x145   : > { %s1413_s1 = scalar_lea.hbm %s1412_s2, 128  ;;  %s1417_s25 = scalar_lea.hbm %s1883_s4, 256 }
 0x146   : > { %p1414_p12 = scmp.ne.s32.totalorder %s1412_s2, %s1413_s1  ;;  %p1418_p3 = scmp.lt.s32.totalorder %s1412_s2, %s1883_s4 }
 0x147   : > { %p1419_p5 = scmp.lt.s32.totalorder %s1417_s25, %s1413_s1 }
 0x148   : > { %p1415_p13 = pnand %p1414_p12, %p1634_p7 }
 0x149   : > { %p1420_p1 = por %p1419_p5, %p1418_p3 }
 0x14a   : > { %p1416_p0 = pneg %p1415_p13 }
 0x14c   : > { %p1421_p4 = pnand %p1420_p1, %p1416_p0 }
 0x14e   : > { %1424 = shalt.err (!%p1421_p4)
}
 0x14f   : > { %1170 = dma.vmem_to_hbm [thread:$0]  (%p1634_p7), %s1797_s12, 2048, %s781_s0, %s756_s19, %s1512_s8, %s1512_s8, %s1513_s9   ;;  %v736_v30 = vpop.f32.mrf.mxu3  ;;  %v726_v31 = vpop.f32.mrf.mxu2 }
 0x150   : > { %754 = vst [vmem:[%s1733_s20 + $0x78] sm:$0xff] %v736_v30  ;;  %s1439_s18 = sshra.s32 %s815_s15, 4  ;;  %s1445_s1 = scalar_lea.hbm %s1885_s6, 256  ;;  %s1440_s18 = int_to_ptr.hbm [resolvable:$true] %s1439_s18 }
 0x151   : > { %750 = vst [vmem:[%s1733_s20 + $0x58] sm:$0xff] %v726_v31  ;;  %s1441_s16 = scalar_lea.hbm %s1440_s18, 128  ;;  %p1446_p2 = scmp.lt.s32.totalorder %s1440_s18, %s1885_s6 }
 0x152   : > { %p1442_p8 = scmp.ne.s32.totalorder %s1440_s18, %s1441_s16  ;;  %p1447_p10 = scmp.lt.s32.totalorder %s1445_s1, %s1441_s16 }
 0x154   : > { %p1443_p11 = pnand %p1442_p8, %p1634_p7  ;;  %p1448_p12 = por %p1447_p10, %p1446_p2 }
 0x156   : > { %p1444_p9 = pneg %p1443_p11 }
 0x158   : > { %p1449_p13 = pnand %p1448_p12, %p1444_p9 }
 0x15a   : > { %1452 = shalt.err (!%p1449_p13)
}
 0x15b   : > { %1172 = dma.vmem_to_hbm [thread:$0]  (%p1634_p7), %s813_s17, 2048, %s815_s15, %s1804_s29, %s1512_s8, %s1512_s8, %s1513_s9  }
 0x15c PF: > { %s829_s20 = sand.u32 1, %s1491_s21   ;;  %p1899_p0 = scmp.ge.s32.totalorder %s1503_s24, 2 }
 0x15d   : > { %s830_s12 = scalar_lea.sflag [#allocation4], %s829_s20 }
 0x15e   : > { %p1191_p3 = pnand %p1899_p0, %p1586_p6 }
 0x160   : > { %p1192_p5 = pneg %p1191_p3 }
 0x162   : > { %1482 = dma.done.wait (%p1192_p5), %s830_s12, 2048  }
 0x163   : > { %1484 = vsyncadd (%p1192_p5), %s830_s12, 4294965248  ;;  %s1900_s19 = sadd.s32 4294967294, %s1503_s24  }
 0x164   : > { %s839_s14 = sand.u32 1, %s1900_s19  }
 0x165   : > { %s840_s30 = scalar_lea.sflag [#allocation12], %s839_s14 }
 0x166   : > { %1486 = dma.done.wait (%p1192_p5), %s840_s30, 4096  }
 0x167   : > { %1488 = vsyncadd (%p1192_p5), %s840_s30, 4294963200  ;;  %p25_p7 = scmp.ge.s32.totalorder %s1618_s7, 4   ;;  %s1901_s21 = smov %s1495_s22 }
 0x168   : > { %s1902_s22 = smov %s1499_s23  ;;  %s1903_s23 = smov %s1630_s13 }
 0x169   : > { %s1904_s24 = smov %s1618_s7  ;;  %27 = sbr.rel (!%p25_p7) target bundleno = 13 (0xd), region = 125 }
 0x16e   :  { %856 = vsyncpa [#allocation3], 1 }
 0x16f   :  { %858 = vsyncpa [#allocation3 + $0x1], 1 }
 0x170   :  { %859 = vsyncpa [#allocation6], 1 }
 0x171   :  { %860 = vsyncpa [#allocation9], 1 }
 0x172   :  { %861 = vsyncpa [#allocation4], 1 }
 0x173   :  { %863 = vsyncpa [#allocation4 + $0x1], 1 }
 0x174   :  { %864 = vsyncpa [#allocation12], 1 }
 0x175   :  { %866 = vsyncpa [#allocation12 + $0x1], 1 }

</bundles_post_ra>
